<compile_context>
chip_gen: v6e
topology: v6e:2x2x1
jax: 0.10.0
libtpu: 0.0.40
codegen_flags: <defaults>
</compile_context>

<pallas_src>
import re
from functools import partial

import jax
import jax.numpy as jnp
import numpy as np
from jax.experimental import pallas as pl
from jax.experimental.pallas import tpu as pltpu

H = 256   # LSTM input / hidden size fixed by the module
G = 3     # live gates: i, g, o  (forget gate is dead because c_0 == 0)


def _round_up(n, m):
    return ((n + m - 1) // m) * m


def _tpu_generation():
    try:
        kind = jax.devices()[0].device_kind
    except Exception:  # pragma: no cover - defensive; default to conservative path
        return 0
    m = re.search(r"(\d+)", kind)
    return int(m.group(1)) if m else 0


def _kernel_config(gen=None):
    """(nonlinearity dtype, MXU M granule, dual-TensorCore?) per generation."""
    if gen is None:
        gen = _tpu_generation()
    nl_dtype = jnp.bfloat16 if gen >= 6 else jnp.float32  # bf16 EUP/VPU only on v6e/v7x
    granule = 256 if gen >= 6 else 128                    # 2x256^2 MXU vs 4x128^2
    dual_tc = gen >= 7                                    # v7x: 2 TensorCores / chip
    return nl_dtype, granule, dual_tc


def _choose_tb(B, *, granule, dual_tc, cap=1024):
    """Batch-tile rows per grid step.

    * single-TC chips: one tile whenever it fits (cap rows ~ <=12 MiB live).
    * dual-TC v7x: an even number of equal tiles so neither core idles.
    * tiles aligned to the MXU M granule once they are that big, but only if
      the alignment adds <= ~12.5% padded rows (padded rows cost EUP/MXU work).
    """
    b = _round_up(B, 8)
    if dual_tc and b >= 128:
        n_tiles = 2
        while -(-b // n_tiles) > cap:
            n_tiles += 2
    else:
        n_tiles = max(1, -(-b // cap))
    tb = _round_up(-(-b // n_tiles), 8)
    tb_g = _round_up(tb, granule)
    if tb >= granule and (n_tiles * tb_g - b) * 8 <= b:
        tb = tb_g
    return tb


def _sigmoid_1eup(x):
    """sigmoid(x) = 0.5*tanh(0.5*x) + 0.5.

    One EUP push (tanh) plus cheap VPU mul/add, instead of the exp+reciprocal
    pair jax.nn.sigmoid can lower to — the EUP is the binding slot on v6e/v7x.
    """
    return 0.5 * jnp.tanh(0.5 * x) + 0.5


def _lstm_gates_to_h(g, nl_dtype):
    """(tb, 3H) live gates [i | g | o] -> h, with c_0 = 0 (forget gate dead)."""
    g = g.astype(nl_dtype)                       # bf16 on v6e/v7x, f32 on v5e-
    c = _sigmoid_1eup(g[:, 0:H]) * jnp.tanh(g[:, H:2 * H])
    return _sigmoid_1eup(g[:, 2 * H:3 * H]) * jnp.tanh(c)


def _global_encoder_kernel(x_ref, w_ref, b_ref, out_ref, *, nl_dtype):
    """Two-layer LSTM (one timestep, h_0 = c_0 = 0) + MaxPool1d(2, 2).

    With a single timestep and zero initial state:
        gates = x @ W_ih^T + (b_ih + b_hh)     # W_hh @ h_0 == 0 -> skipped
        c     = sigmoid(i) * tanh(g)           # f * c_0 == 0    -> f gate dropped
        h     = sigmoid(o) * tanh(c)
    Weights are pre-sliced to the 3 live gates (i, g, o), pre-transposed,
    stored in bf16; layer-1 hidden units are pre-permuted even-first so the
    MaxPool1d(2, 2) becomes a max of two contiguous 128-lane halves.
    """
    x = x_ref[...].astype(jnp.bfloat16)          # no-op if x already streamed as bf16

    # ----- LSTM layer 0 (bf16 MXU operands, f32 accumulate) -----
    g0 = jnp.dot(x, w_ref[0], preferred_element_type=jnp.float32) + b_ref[0]
    h0 = _lstm_gates_to_h(g0, nl_dtype)

    # ----- LSTM layer 1 (hidden units even/odd-permuted for pooling) -----
    g1 = jnp.dot(h0.astype(jnp.bfloat16), w_ref[1],
                 preferred_element_type=jnp.float32) + b_ref[1]
    h1 = _lstm_gates_to_h(g1, nl_dtype)

    # ----- MaxPool1d(kernel=2, stride=2) over the (permuted) feature axis -----
    out_ref[...] = jnp.maximum(h1[:, :H // 2], h1[:, H // 2:]).astype(out_ref.dtype)


def global_encoder(x, w, b, *, tb=None, nl_dtype=None):
    """x: (B, 256) f32/bf16 ; w: (2, 256, 3H) bf16 ; b: (2, 1, 3H) f32 -> (B, 1, 128)."""
    B = x.shape[0]
    cfg_nl, granule, dual_tc = _kernel_config()
    if nl_dtype is None:
        nl_dtype = cfg_nl
    if tb is None:
        tb = _choose_tb(B, granule=granule, dual_tc=dual_tc)
    B_pad = _round_up(B, tb)
    if B_pad != B:                               # pad tail rows (results sliced off below)
        x = jnp.pad(x, ((0, B_pad - B), (0, 0)))
    out = pl.pallas_call(
        partial(_global_encoder_kernel, nl_dtype=nl_dtype),
        out_shape=jax.ShapeDtypeStruct((B_pad, H // 2), jnp.float32),
        grid_spec=pltpu.PrefetchScalarGridSpec(
            num_scalar_prefetch=0,
            grid=(B_pad // tb,),
            in_specs=[
                pl.BlockSpec((tb, H), lambda i: (i, 0)),            # x tile (streamed)
                pl.BlockSpec((2, H, G * H), lambda i: (0, 0, 0)),   # both layers' W_ih^T (bf16)
                pl.BlockSpec((2, 1, G * H), lambda i: (0, 0, 0)),   # both layers' folded bias
            ],
            out_specs=pl.BlockSpec((tb, H // 2), lambda i: (i, 0)),
        ),
        compiler_params=pltpu.CompilerParams(
            dimension_semantics=("parallel",),        # shards grid across v7x's 2 TCs
            vmem_limit_bytes=32 << 20,                # tb=1024 live set ~12 MiB << 32 MiB
        ),
    )(x, w, b)
    return out[:B, None, :]   # (B, 1, 128) — matches PyTorch MaxPool1d output


def pack_lstm_params(p):
    """Fold PyTorch LSTM params into the kernel layout.

    Keeps only the live gates (i, g, o), folds b_ih + b_hh, transposes W_ih,
    permutes layer-1 hidden units even-first (pre-folds the MaxPool layout),
    and casts weights to bf16 (matmuls accumulate in f32).
    """
    gates = jnp.array([0, 2, 3])                                       # i, g, o
    perm = jnp.concatenate([jnp.arange(0, H, 2), jnp.arange(1, H, 2)])

    w0 = p["w_ih_l0"].reshape(4, H, H)[gates].reshape(G * H, H).T
    b0 = (p["b_ih_l0"] + p["b_hh_l0"]).reshape(4, H)[gates].reshape(1, G * H)
    w1 = p["w_ih_l1"].reshape(4, H, H)[gates][:, perm, :].reshape(G * H, H).T
    b1 = (p["b_ih_l1"] + p["b_hh_l1"]).reshape(4, H)[gates][:, perm].reshape(1, G * H)

    w = jnp.stack([w0, w1]).astype(jnp.bfloat16)                       # (2, 256, 768)
    b = jnp.stack([b0, b1]).astype(jnp.float32)                        # (2, 1, 768)
    return w, b


# ---------------- pure-JAX reference (full LSTM cell) for correctness ----------------
def _lstm_cell_ref(inp, w_ih, w_hh, b_ih, b_hh, h, c):
    gates = inp @ w_ih.T + b_ih + h @ w_hh.T + b_hh
    i, f, g, o = jnp.split(gates, 4, axis=1)
    i, f, g, o = jax.nn.sigmoid(i), jax.nn.sigmoid(f), jnp.tanh(g), jax.nn.sigmoid(o)
    c = f * c + i * g
    return o * jnp.tanh(c), c


def global_encoder_ref(x, p):
    B = x.shape[0]
    z = jnp.zeros((B, H), jnp.float32)
    h0, _ = _lstm_cell_ref(x, p["w_ih_l0"], p["w_hh_l0"], p["b_ih_l0"], p["b_hh_l0"], z, z)
    h1, _ = _lstm_cell_ref(h0, p["w_ih_l1"], p["w_hh_l1"], p["b_ih_l1"], p["b_hh_l1"], z, z)
    pooled = jnp.max(h1.reshape(B, H // 2, 2), axis=-1)                # MaxPool1d(2, 2) on L=256
    return pooled[:, None, :]


if __name__ == "__main__":
    B = 5   # deliberately NOT a multiple of 8 -> exercises the padding path
    key = jax.random.PRNGKey(0)
    ks = jax.random.split(key, 9)
    bound = 1.0 / float(np.sqrt(H))   # PyTorch default LSTM init: U(-1/sqrt(H), 1/sqrt(H))
    u = lambda k, shape: jax.random.uniform(k, shape, jnp.float32, -bound, bound)
    params = {
        "w_ih_l0": u(ks[0], (4 * H, H)), "w_hh_l0": u(ks[1], (4 * H, H)),
        "b_ih_l0": u(ks[2], (4 * H,)),   "b_hh_l0": u(ks[3], (4 * H,)),
        "w_ih_l1": u(ks[4], (4 * H, H)), "w_hh_l1": u(ks[5], (4 * H, H)),
        "b_ih_l1": u(ks[6], (4 * H,)),   "b_hh_l1": u(ks[7], (4 * H,)),
    }
    x = jax.random.uniform(ks[8], (B, H), jnp.float32, -1.0, 1.0)

    w, b = pack_lstm_params(params)
    out = jax.block_until_ready(global_encoder(x, w, b))

    ref = jax.block_until_ready(global_encoder_ref(x, params))
    assert out.shape == (B, 1, H // 2), out.shape
    np.testing.assert_allclose(np.asarray(out), np.asarray(ref), rtol=1e-2, atol=1e-2)
    print("KERNEL_OK")
</pallas_src>

<mosaic_0001>
module attributes {stable_mosaic.version = 11 : i64} {
  func.func @_global_encoder_kernel(%arg0: i32, %arg1: memref<8x256xf32, #tpu.memory_space<vmem>>, %arg2: memref<2x256x768xbf16, #tpu.memory_space<vmem>>, %arg3: memref<2x1x768xf32, #tpu.memory_space<vmem>>, %arg4: memref<8x128xf32, #tpu.memory_space<vmem>>) attributes {dimension_semantics = [#tpu.dimension_semantics<parallel>], iteration_bounds = array<i64: 1>, scalar_prefetch = 0 : i64, scratch_operands = 0 : i64, tpu.core_type = #tpu.core_type<tc>, window_params = [{transform_indices = @transform_0, window_bounds = array<i64: 8, 256>}, {pipeline_mode = #tpu.pipeline_mode<synchronous>, transform_indices = @transform_1, window_bounds = array<i64: 2, 256, 768>}, {pipeline_mode = #tpu.pipeline_mode<synchronous>, transform_indices = @transform_2, window_bounds = array<i64: 2, 1, 768>}, {transform_indices = @transform_3, window_bounds = array<i64: 8, 128>}]} {
    %c0 = arith.constant 0 : index
    %c0_0 = arith.constant 0 : index
    %0 = vector.load %arg1[%c0, %c0_0] : memref<8x256xf32, #tpu.memory_space<vmem>>, vector<8x256xf32>
    %1 = arith.truncf %0 : vector<8x256xf32> to vector<8x256xbf16>
    %c0_1 = arith.constant 0 : index
    %c0_2 = arith.constant 0 : index
    %c0_3 = arith.constant 0 : index
    %2 = vector.load %arg2[%c0_1, %c0_2, %c0_3] : memref<2x256x768xbf16, #tpu.memory_space<vmem>>, vector<1x256x768xbf16>
    %3 = vector.shape_cast %2 : vector<1x256x768xbf16> to vector<256x768xbf16>
    %cst = arith.constant dense<0.000000e+00> : vector<8x768xf32>
    %4 = tpu.matmul %1, %3, %cst {dimension_numbers = #tpu.dot_dimension_numbers<[1], [0], [0], [1], [0, 0, 1, 1], [], []>} : vector<8x256xbf16>, vector<256x768xbf16>, vector<8x768xf32> -> vector<8x768xf32>
    %c0_4 = arith.constant 0 : index
    %c0_5 = arith.constant 0 : index
    %c0_6 = arith.constant 0 : index
    %5 = vector.load %arg3[%c0_4, %c0_5, %c0_6] : memref<2x1x768xf32, #tpu.memory_space<vmem>>, vector<1x1x768xf32>
    %6 = vector.shape_cast %5 : vector<1x1x768xf32> to vector<1x768xf32>
    %7 = vector.broadcast %6 : vector<1x768xf32> to vector<8x768xf32>
    %8 = arith.addf %4, %7 : vector<8x768xf32>
    %9 = vector.extract_strided_slice %8 {offsets = [0, 0], sizes = [8, 256], strides = [1, 1]} : vector<8x768xf32> to vector<8x256xf32>
    %cst_7 = arith.constant 5.000000e-01 : f32
    %10 = vector.broadcast %cst_7 : f32 to vector<8x256xf32>
    %11 = arith.mulf %10, %9 : vector<8x256xf32>
    %12 = math.tanh %11 : vector<8x256xf32>
    %cst_8 = arith.constant 5.000000e-01 : f32
    %13 = vector.broadcast %cst_8 : f32 to vector<8x256xf32>
    %14 = arith.mulf %13, %12 : vector<8x256xf32>
    %cst_9 = arith.constant 5.000000e-01 : f32
    %15 = vector.broadcast %cst_9 : f32 to vector<8x256xf32>
    %16 = arith.addf %14, %15 : vector<8x256xf32>
    %17 = vector.extract_strided_slice %8 {offsets = [0, 256], sizes = [8, 256], strides = [1, 1]} : vector<8x768xf32> to vector<8x256xf32>
    %18 = math.tanh %17 : vector<8x256xf32>
    %19 = arith.mulf %16, %18 : vector<8x256xf32>
    %20 = vector.extract_strided_slice %8 {offsets = [0, 512], sizes = [8, 256], strides = [1, 1]} : vector<8x768xf32> to vector<8x256xf32>
    %cst_10 = arith.constant 5.000000e-01 : f32
    %21 = vector.broadcast %cst_10 : f32 to vector<8x256xf32>
    %22 = arith.mulf %21, %20 : vector<8x256xf32>
    %23 = math.tanh %22 : vector<8x256xf32>
    %cst_11 = arith.constant 5.000000e-01 : f32
    %24 = vector.broadcast %cst_11 : f32 to vector<8x256xf32>
    %25 = arith.mulf %24, %23 : vector<8x256xf32>
    %cst_12 = arith.constant 5.000000e-01 : f32
    %26 = vector.broadcast %cst_12 : f32 to vector<8x256xf32>
    %27 = arith.addf %25, %26 : vector<8x256xf32>
    %28 = math.tanh %19 : vector<8x256xf32>
    %29 = arith.mulf %27, %28 : vector<8x256xf32>
    %30 = arith.truncf %29 : vector<8x256xf32> to vector<8x256xbf16>
    %c1 = arith.constant 1 : index
    %c0_13 = arith.constant 0 : index
    %c0_14 = arith.constant 0 : index
    %31 = vector.load %arg2[%c1, %c0_13, %c0_14] : memref<2x256x768xbf16, #tpu.memory_space<vmem>>, vector<1x256x768xbf16>
    %32 = vector.shape_cast %31 : vector<1x256x768xbf16> to vector<256x768xbf16>
    %cst_15 = arith.constant dense<0.000000e+00> : vector<8x768xf32>
    %33 = tpu.matmul %30, %32, %cst_15 {dimension_numbers = #tpu.dot_dimension_numbers<[1], [0], [0], [1], [0, 0, 1, 1], [], []>} : vector<8x256xbf16>, vector<256x768xbf16>, vector<8x768xf32> -> vector<8x768xf32>
    %c1_16 = arith.constant 1 : index
    %c0_17 = arith.constant 0 : index
    %c0_18 = arith.constant 0 : index
    %34 = vector.load %arg3[%c1_16, %c0_17, %c0_18] : memref<2x1x768xf32, #tpu.memory_space<vmem>>, vector<1x1x768xf32>
    %35 = vector.shape_cast %34 : vector<1x1x768xf32> to vector<1x768xf32>
    %36 = vector.broadcast %35 : vector<1x768xf32> to vector<8x768xf32>
    %37 = arith.addf %33, %36 : vector<8x768xf32>
    %38 = vector.extract_strided_slice %37 {offsets = [0, 0], sizes = [8, 256], strides = [1, 1]} : vector<8x768xf32> to vector<8x256xf32>
    %cst_19 = arith.constant 5.000000e-01 : f32
    %39 = vector.broadcast %cst_19 : f32 to vector<8x256xf32>
    %40 = arith.mulf %39, %38 : vector<8x256xf32>
    %41 = math.tanh %40 : vector<8x256xf32>
    %cst_20 = arith.constant 5.000000e-01 : f32
    %42 = vector.broadcast %cst_20 : f32 to vector<8x256xf32>
    %43 = arith.mulf %42, %41 : vector<8x256xf32>
    %cst_21 = arith.constant 5.000000e-01 : f32
    %44 = vector.broadcast %cst_21 : f32 to vector<8x256xf32>
    %45 = arith.addf %43, %44 : vector<8x256xf32>
    %46 = vector.extract_strided_slice %37 {offsets = [0, 256], sizes = [8, 256], strides = [1, 1]} : vector<8x768xf32> to vector<8x256xf32>
    %47 = math.tanh %46 : vector<8x256xf32>
    %48 = arith.mulf %45, %47 : vector<8x256xf32>
    %49 = vector.extract_strided_slice %37 {offsets = [0, 512], sizes = [8, 256], strides = [1, 1]} : vector<8x768xf32> to vector<8x256xf32>
    %cst_22 = arith.constant 5.000000e-01 : f32
    %50 = vector.broadcast %cst_22 : f32 to vector<8x256xf32>
    %51 = arith.mulf %50, %49 : vector<8x256xf32>
    %52 = math.tanh %51 : vector<8x256xf32>
    %cst_23 = arith.constant 5.000000e-01 : f32
    %53 = vector.broadcast %cst_23 : f32 to vector<8x256xf32>
    %54 = arith.mulf %53, %52 : vector<8x256xf32>
    %cst_24 = arith.constant 5.000000e-01 : f32
    %55 = vector.broadcast %cst_24 : f32 to vector<8x256xf32>
    %56 = arith.addf %54, %55 : vector<8x256xf32>
    %57 = math.tanh %48 : vector<8x256xf32>
    %58 = arith.mulf %56, %57 : vector<8x256xf32>
    %59 = vector.extract_strided_slice %58 {offsets = [0, 0], sizes = [8, 128], strides = [1, 1]} : vector<8x256xf32> to vector<8x128xf32>
    %60 = vector.extract_strided_slice %58 {offsets = [0, 128], sizes = [8, 128], strides = [1, 1]} : vector<8x256xf32> to vector<8x128xf32>
    %61 = arith.maximumf %59, %60 : vector<8x128xf32>
    %c0_25 = arith.constant 0 : index
    %c0_26 = arith.constant 0 : index
    %62 = vector.load %arg4[%c0_25, %c0_26] : memref<8x128xf32, #tpu.memory_space<vmem>>, vector<8x128xf32>
    tpu.vector_store %arg4[%c0_25, %c0_26], %61 {strides = array<i32>} : memref<8x128xf32, #tpu.memory_space<vmem>>, vector<8x128xf32>,
    return
  }
  func.func @transform_0(%arg0: i32) -> (i32, i32) {
    %c0_i32 = arith.constant 0 : i32
    %c0_i32_0 = arith.constant 0 : i32
    return %arg0, %c0_i32 : i32, i32
  }
  func.func @transform_1(%arg0: i32) -> (i32, i32, i32) {
    %c0_i32 = arith.constant 0 : i32
    %c0_i32_0 = arith.constant 0 : i32
    %c0_i32_1 = arith.constant 0 : i32
    %c0_i32_2 = arith.constant 0 : i32
    return %c0_i32, %c0_i32_0, %c0_i32_1 : i32, i32, i32
  }
  func.func @transform_2(%arg0: i32) -> (i32, i32, i32) {
    %c0_i32 = arith.constant 0 : i32
    %c0_i32_0 = arith.constant 0 : i32
    %c0_i32_1 = arith.constant 0 : i32
    %c0_i32_2 = arith.constant 0 : i32
    return %c0_i32, %c0_i32_0, %c0_i32_1 : i32, i32, i32
  }
  func.func @transform_3(%arg0: i32) -> (i32, i32) {
    %c0_i32 = arith.constant 0 : i32
    %c0_i32_0 = arith.constant 0 : i32
    return %arg0, %c0_i32 : i32, i32
  }
}

</mosaic_0001>

<bundles_post_ra>
// kernel: tpu_custom_call.1
= control target key start
LH: loop header
LB: loop body
LE: loop exit
PB: predicated region body
PF: predicated region fallthrough
CT: control target
= control target key end

     0   :  { %8 = vsyncpa [#allocation3], 0  ;;  %s2278_s0 = inlined_call_operand.hbm [shape: f32[8,256], index: 0, kind: input, shape index: {}]   ;;  %s2279_s1 = inlined_call_operand.hbm [shape: bf16[2,256,768], index: 1, kind: input, shape index: {}]   ;;  %s2280_s2 = inlined_call_operand.hbm [shape: f32[2,1,768], index: 2, kind: input, shape index: {}]   ;;  %s2281_s3 = inlined_call_operand.hbm [shape: f32[8,128], index: 3, kind: output, shape index: {}]  }
   0x1   :  { %9 = vsyncpa [#allocation6], 0 }
   0x2   :  { %10 = vsyncpa [#allocation4], 0  ;;  %s2196_s12 = smov [#allocation5]  }
   0x3   :  { %s26_s13 = sshll.u32 %s2196_s12, 4  ;;  %s27_s13 = int_to_ptr.vmem [resolvable:$true] %s26_s13 }
   0x4   :  { %s2118_s14 = scalar_lea.vmem %s27_s13, 24576  ;;  %p2123_p1 = scmp.lt.s32.totalorder %s27_s13, %s27_s13 }
   0x5   :  { %p2119_p0 = scmp.ne.s32.totalorder %s27_s13, %s2118_s14  ;;  %p2124_p2 = scmp.lt.s32.totalorder %s2118_s14, %s2118_s14 }
   0x7   :  { %p2125_p3 = por %p2124_p2, %p2123_p1 }
   0x9   :  { %p2126_p4 = pnand %p2125_p3, %p2119_p0 }
   0xb   :  { %2129 = shalt.err (!%p2126_p4)
}
   0xc   :  { %s2197_s15 = smov 384   ;;  %s2198_s16 = smov 24  }
   0xd   :  { %32 = dma.hbm_to_vmem [thread:$0]  %s2279_s1, 24576, %s27_s13, [#allocation6], %s2197_s15, %s2197_s15, %s2198_s16  }
   0xe   :  { %s2199_s19 = smov [#allocation2]   ;;  %s2200_s21 = smov [#allocation7]  }
   0xf   :  { %s17_s20 = sshll.u32 %s2199_s19, 4  ;;  %s38_s22 = sshll.u32 %s2200_s21, 4  ;;  %s18_s20 = int_to_ptr.vmem [resolvable:$true] %s17_s20  ;;  %s39_s22 = int_to_ptr.vmem [resolvable:$true] %s38_s22 }
  0x10   :  { %s2138_s23 = scalar_lea.vmem %s18_s20, 256  ;;  %p2143_p6 = scmp.lt.s32.totalorder %s18_s20, %s18_s20 }
  0x11   :  { %p2139_p5 = scmp.ne.s32.totalorder %s18_s20, %s2138_s23  ;;  %p2144_p7 = scmp.lt.s32.totalorder %s2138_s23, %s2138_s23 }
  0x13   :  { %p2145_p8 = por %p2144_p7, %p2143_p6 }
  0x15   :  { %p2146_p9 = pnand %p2145_p8, %p2139_p5 }
  0x17   :  { %2149 = shalt.err (!%p2146_p9)
}
  0x18   :  { %20 = dma.hbm_to_vmem [thread:$0]  %s2278_s0, 256, %s18_s20, [#allocation3]  }
  0x19   :  { %s2158_s26 = scalar_lea.vmem %s39_s22, 192  ;;  %p2163_p11 = scmp.lt.s32.totalorder %s39_s22, %s39_s22 }
  0x1a   :  { %p2159_p10 = scmp.ne.s32.totalorder %s39_s22, %s2158_s26  ;;  %p2164_p12 = scmp.lt.s32.totalorder %s2158_s26, %s2158_s26 }
  0x1c   :  { %p2165_p13 = por %p2164_p12, %p2163_p11 }
  0x1e   :  { %p2166_p0 = pnand %p2165_p13, %p2159_p10 }
  0x20   :  { %2169 = shalt.err (!%p2166_p0)
}
  0x21   :  { %s2201_s1 = smov 96   ;;  %s2202_s27 = smov 6  }
  0x22   :  { %44 = dma.hbm_to_vmem [thread:$0]  %s2280_s2, 192, %s39_s22, [#allocation6], %s2201_s1, %s2201_s1, %s2202_s27  }
  0x23   :  { %2190 = dma.done.wait [#allocation3], 256  }
  0x24   :  { %2191 = vsyncadd [#allocation3], 4294967040 }
  0x25   :  { %2192 = dma.done.wait [#allocation6], 24768  }
  0x26   :  { %2193 = vsyncadd [#allocation6], 4294942528  ;;  %v1790_v0 = vld [vmem:[#allocation5 + $0x154] ss:$24 sps:$4 sm:$0xff]   ;;  %v1792_v1 = vld [vmem:[#allocation5 + $0x150] ss:$24 sps:$4 sm:$0xff]  }
  0x27   :  { %666 = vmatprep.subr.bf16.mxu0 %v1790_v0  ;;  %v1793_v2 = vld [vmem:[#allocation5 + $0x124] ss:$24 sps:$4 sm:$0xff]   ;;  %v1795_v3 = vld [vmem:[#allocation5 + $0x120] ss:$24 sps:$4 sm:$0xff]   ;;  %v1799_v6 = vld [vmem:[#allocation5 + $0xf4] ss:$24 sps:$4 sm:$0xff]  }
  0x28   :  { %667 = vmatpush1.bf16.msra.mxu0 %v1792_v1  ;;  %v1796_v4 = vld [vmem:[#allocation5 + $0x15c] ss:$24 sps:$4 sm:$0xff]   ;;  %v1798_v5 = vld [vmem:[#allocation5 + $0x158] ss:$24 sps:$4 sm:$0xff]   ;;  %v1802_v7 = vld [vmem:[#allocation5 + $0x12c] ss:$24 sps:$4 sm:$0xff]  }
  0x29   :  { %668 = vmatprep.subr.bf16.mxu0 %v1793_v2  ;;  %707 = vmatprep.subr.bf16.mxu1 %v1796_v4  ;;  %v1804_v8 = vld [vmem:[#allocation5 + $0x128] ss:$24 sps:$4 sm:$0xff]   ;;  %v1805_v10 = vld [vmem:[#allocation5 + $0xc4] ss:$24 sps:$4 sm:$0xff]   ;;  %v1810_v12 = vld [vmem:[#allocation5 + $0xf8] ss:$24 sps:$4 sm:$0xff]  }
  0x2a   :  { %708 = vmatpush1.bf16.msra.mxu1 %v1798_v5  ;;  %v1801_v9 = vld [vmem:[#allocation5 + $0xf0] ss:$24 sps:$4 sm:$0xff]   ;;  %v1808_v11 = vld [vmem:[#allocation5 + $0xfc] ss:$24 sps:$4 sm:$0xff]   ;;  %v1807_v13 = vld [vmem:[#allocation5 + $0xc0] ss:$24 sps:$4 sm:$0xff]  }
  0x2b   :  { %709 = vmatprep.subr.bf16.mxu1 %v1802_v7  ;;  %v1814_v14 = vld [vmem:[#allocation5 + $0xcc] ss:$24 sps:$4 sm:$0xff]   ;;  %v1816_v16 = vld [vmem:[#allocation5 + $0xc8] ss:$24 sps:$4 sm:$0xff]   ;;  %v1820_v18 = vld [vmem:[#allocation5 + $0x9c] ss:$24 sps:$4 sm:$0xff]  }
  0x2c   :  { %669 = vmatpush1.bf16.msra.mxu0 %v1795_v3  ;;  %v1811_v15 = vld [vmem:[#allocation5 + $0x94] ss:$24 sps:$4 sm:$0xff]   ;;  %v1813_v17 = vld [vmem:[#allocation5 + $0x90] ss:$24 sps:$4 sm:$0xff]   ;;  %v1817_v19 = vld [vmem:[#allocation5 + $0x64] ss:$24 sps:$4 sm:$0xff]  }
  0x2d   :  { %670 = vmatprep.subr.bf16.mxu0 %v1799_v6  ;;  %v1822_v20 = vld [vmem:[#allocation5 + $0x98] ss:$24 sps:$4 sm:$0xff]   ;;  %v1826_v22 = vld [vmem:[#allocation5 + $0x6c] ss:$24 sps:$4 sm:$0xff]   ;;  %v1828_v24 = vld [vmem:[#allocation5 + $0x68] ss:$24 sps:$4 sm:$0xff]  }
  0x2e   :  { %710 = vmatpush1.bf16.msra.mxu1 %v1804_v8  ;;  %v1819_v21 = vld [vmem:[#allocation5 + $0x60] ss:$24 sps:$4 sm:$0xff]   ;;  %v1823_v23 = vld [vmem:[#allocation5 + $0x34] ss:$24 sps:$4 sm:$0xff]   ;;  %v1825_v25 = vld [vmem:[#allocation5 + $0x30] ss:$24 sps:$4 sm:$0xff]  }
  0x2f   :  { %711 = vmatprep.subr.bf16.mxu1 %v1808_v11  ;;  %v1832_v26 = vld [vmem:[#allocation5 + $0x3c] ss:$24 sps:$4 sm:$0xff]   ;;  %v1834_v28 = vld [vmem:[#allocation5 + $0x38] ss:$24 sps:$4 sm:$0xff]   ;;  %v1838_v30 = vld [vmem:[#allocation5 + $0xc] ss:$24 sps:$4 sm:$0xff]  }
  0x30   :  { %671 = vmatpush1.bf16.msra.mxu0 %v1801_v9  ;;  %v1829_v27 = vld [vmem:[#allocation5 + $0x4] ss:$24 sps:$4 sm:$0xff]   ;;  %v1831_v29 = vld [vmem:[#allocation5] ss:$24 sps:$4 sm:$0xff]   ;;  %v1835_v31 = vld [vmem:[#allocation5 + $0x2d4] ss:$24 sps:$4 sm:$0xff]  }
  0x31   :  { %672 = vmatprep.subr.bf16.mxu0 %v1805_v10  ;;  %v1840_v32 = vld [vmem:[#allocation5 + $0x8] ss:$24 sps:$4 sm:$0xff]   ;;  %v1844_v34 = vld [vmem:[#allocation5 + $0x2dc] ss:$24 sps:$4 sm:$0xff]   ;;  %v1846_v36 = vld [vmem:[#allocation5 + $0x2d8] ss:$24 sps:$4 sm:$0xff]  }
  0x32   :  { %712 = vmatpush1.bf16.msra.mxu1 %v1810_v12  ;;  %v1837_v33 = vld [vmem:[#allocation5 + $0x2d0] ss:$24 sps:$4 sm:$0xff]   ;;  %v1841_v35 = vld [vmem:[#allocation5 + $0x2a4] ss:$24 sps:$4 sm:$0xff]   ;;  %v1843_v37 = vld [vmem:[#allocation5 + $0x2a0] ss:$24 sps:$4 sm:$0xff]  }
  0x33   :  { %713 = vmatprep.subr.bf16.mxu1 %v1814_v14  ;;  %v1850_v38 = vld [vmem:[#allocation5 + $0x2ac] ss:$24 sps:$4 sm:$0xff]   ;;  %v1852_v40 = vld [vmem:[#allocation5 + $0x2a8] ss:$24 sps:$4 sm:$0xff]   ;;  %v1856_v42 = vld [vmem:[#allocation5 + $0x27c] ss:$24 sps:$4 sm:$0xff]  }
  0x34   :  { %673 = vmatpush1.bf16.msra.mxu0 %v1807_v13  ;;  %v1847_v39 = vld [vmem:[#allocation5 + $0x274] ss:$24 sps:$4 sm:$0xff]   ;;  %v1849_v41 = vld [vmem:[#allocation5 + $0x270] ss:$24 sps:$4 sm:$0xff]   ;;  %v1853_v43 = vld [vmem:[#allocation5 + $0x244] ss:$24 sps:$4 sm:$0xff]  }
  0x35   :  { %674 = vmatprep.subr.bf16.mxu0 %v1811_v15  ;;  %v1855_v44 = vld [vmem:[#allocation5 + $0x240] ss:$24 sps:$4 sm:$0xff]   ;;  %v1862_v48 = vld [vmem:[#allocation5 + $0x24c] ss:$24 sps:$4 sm:$0xff]   ;;  %v1861_v50 = vld [vmem:[#allocation5 + $0x210] ss:$24 sps:$4 sm:$0xff]  }
  0x36   :  { %714 = vmatpush1.bf16.msra.mxu1 %v1816_v16  ;;  %v55_v45 = vld [vmem:[#allocation2 + $0x8] sm:$0xff]  ;;  %v1859_v49 = vld [vmem:[#allocation5 + $0x214] ss:$24 sps:$4 sm:$0xff]   ;;  %v1864_v51 = vld [vmem:[#allocation5 + $0x248] ss:$24 sps:$4 sm:$0xff]   ;;  %s2203_s0 = smov [#allocation8]  }
  0x37   :  { %715 = vmatprep.subr.bf16.mxu1 %v1820_v18  ;;  %v1858_v46 = vld [vmem:[#allocation5 + $0x278] ss:$24 sps:$4 sm:$0xff]   ;;  %v57_v47 = vpack.c.bf16 %v55_v45, %v55_v45  ;;  %v1868_v52 = vld [vmem:[#allocation5 + $0x21c] ss:$24 sps:$4 sm:$0xff]   ;;  %v1874_v56 = vld [vmem:[#allocation5 + $0x1ec] ss:$24 sps:$4 sm:$0xff]  }
  0x38   :  { %675 = vmatpush1.bf16.msra.mxu0 %v1813_v17  ;;  %v1865_v53 = vld [vmem:[#allocation5 + $0x1e4] ss:$24 sps:$4 sm:$0xff]   ;;  %v1867_v54 = vld [vmem:[#allocation5 + $0x1e0] ss:$24 sps:$4 sm:$0xff]   ;;  %v1871_v57 = vld [vmem:[#allocation5 + $0x1b4] ss:$24 sps:$4 sm:$0xff]  }
  0x39   :  { %676 = vmatprep.subr.bf16.mxu0 %v1817_v19  ;;  %698 = vmatprep.mubr.bf16.mxu0 %v57_v47  ;;  %v1870_v55 = vld [vmem:[#allocation5 + $0x218] ss:$24 sps:$4 sm:$0xff]   ;;  %v1876_v59 = vld [vmem:[#allocation5 + $0x1e8] ss:$24 sps:$4 sm:$0xff]   ;;  %v1880_v60 = vld [vmem:[#allocation5 + $0x1bc] ss:$24 sps:$4 sm:$0xff]  }
  0x3a   :  { %716 = vmatpush1.bf16.msra.mxu1 %v1822_v20  ;;  %739 = vmatprep.mubr.bf16.mxu1 %v57_v47  ;;  %v1873_v58 = vld [vmem:[#allocation5 + $0x1b0] ss:$24 sps:$4 sm:$0xff]   ;;  %v1877_v61 = vld [vmem:[#allocation5 + $0x184] ss:$24 sps:$4 sm:$0xff]   ;;  %v1879_v62 = vld [vmem:[#allocation5 + $0x180] ss:$24 sps:$4 sm:$0xff]  }
  0x3b   :  { %717 = vmatprep.subr.bf16.mxu1 %v1826_v22  ;;  %v1882_v63 = vld [vmem:[#allocation5 + $0x1b8] ss:$24 sps:$4 sm:$0xff]   ;;  %v1886_v1 = vld [vmem:[#allocation5 + $0x18c] ss:$24 sps:$4 sm:$0xff]   ;;  %v1888_v4 = vld [vmem:[#allocation5 + $0x188] ss:$24 sps:$4 sm:$0xff]  }
  0x3c   :  { %677 = vmatpush1.bf16.msra.mxu0 %v1819_v21  ;;  %v54_v0 = vld [vmem:[#allocation2] sm:$0xff]  ;;  %v1885_v2 = vld [vmem:[#allocation5 + $0x164] ss:$24 sps:$4 sm:$0xff]   ;;  %v1883_v5 = vld [vmem:[#allocation5 + $0x160] ss:$24 sps:$4 sm:$0xff]   ;;  %s1580_s2 = sshll.u32 %s2203_s0, 4  ;;  %s1581_s2 = int_to_ptr.vmem [resolvable:$true] %s1580_s2 }
  0x3d   :  { %678 = vmatprep.subr.bf16.mxu0 %v1823_v23  ;;  %v2233_v3 = vpack.c.bf16 %v54_v0, %v54_v0  ;;  %v1891_v6 = vld [vmem:[#allocation5 + $0x134] ss:$24 sps:$4 sm:$0xff]   ;;  %v1889_v7 = vld [vmem:[#allocation5 + $0x130] ss:$24 sps:$4 sm:$0xff]   ;;  %v1894_v8 = vld [vmem:[#allocation5 + $0x104] ss:$24 sps:$4 sm:$0xff]   ;;  %p2175_p2 = scmp.lt.s32.totalorder %s1581_s2, %s1581_s2 }
  0x3e   :  { %718 = vmatpush1.bf16.msra.mxu1 %v1828_v24  ;;  %v1892_v9 = vld [vmem:[#allocation5 + $0x100] ss:$24 sps:$4 sm:$0xff]   ;;  %v1897_v10 = vld [vmem:[#allocation5 + $0xd4] ss:$24 sps:$4 sm:$0xff]   ;;  %v1895_v11 = vld [vmem:[#allocation5 + $0xd0] ss:$24 sps:$4 sm:$0xff]  }
  0x3f   :  { %719 = vmatprep.subr.bf16.mxu1 %v1832_v26  ;;  %v1900_v12 = vld [vmem:[#allocation5 + $0xa4] ss:$24 sps:$4 sm:$0xff]   ;;  %v1898_v13 = vld [vmem:[#allocation5 + $0xa0] ss:$24 sps:$4 sm:$0xff]   ;;  %v1903_v14 = vld [vmem:[#allocation5 + $0x74] ss:$24 sps:$4 sm:$0xff]  }
  0x40   :  { %679 = vmatpush1.bf16.msra.mxu0 %v1825_v25  ;;  %v1901_v15 = vld [vmem:[#allocation5 + $0x70] ss:$24 sps:$4 sm:$0xff]   ;;  %v1906_v16 = vld [vmem:[#allocation5 + $0x44] ss:$24 sps:$4 sm:$0xff]   ;;  %v1904_v17 = vld [vmem:[#allocation5 + $0x40] ss:$24 sps:$4 sm:$0xff]  }
  0x41   :  { %680 = vmatprep.subr.bf16.mxu0 %v1829_v27  ;;  %v1909_v18 = vld [vmem:[#allocation5 + $0x14] ss:$24 sps:$4 sm:$0xff]   ;;  %v1907_v19 = vld [vmem:[#allocation5 + $0x10] ss:$24 sps:$4 sm:$0xff]   ;;  %v1912_v20 = vld [vmem:[#allocation5 + $0x2e4] ss:$24 sps:$4 sm:$0xff]  }
  0x42   :  { %720 = vmatpush1.bf16.msra.mxu1 %v1834_v28  ;;  %v1910_v21 = vld [vmem:[#allocation5 + $0x2e0] ss:$24 sps:$4 sm:$0xff]   ;;  %v1915_v22 = vld [vmem:[#allocation5 + $0x2b4] ss:$24 sps:$4 sm:$0xff]   ;;  %v1913_v23 = vld [vmem:[#allocation5 + $0x2b0] ss:$24 sps:$4 sm:$0xff]  }
  0x43   :  { %721 = vmatprep.subr.bf16.mxu1 %v1838_v30  ;;  %v1918_v24 = vld [vmem:[#allocation5 + $0x284] ss:$24 sps:$4 sm:$0xff]   ;;  %v1916_v25 = vld [vmem:[#allocation5 + $0x280] ss:$24 sps:$4 sm:$0xff]   ;;  %v1921_v26 = vld [vmem:[#allocation5 + $0x254] ss:$24 sps:$4 sm:$0xff]  }
  0x44   :  { %681 = vmatpush1.bf16.msra.mxu0 %v1831_v29  ;;  %v1919_v27 = vld [vmem:[#allocation5 + $0x250] ss:$24 sps:$4 sm:$0xff]   ;;  %v1924_v28 = vld [vmem:[#allocation5 + $0x224] ss:$24 sps:$4 sm:$0xff]   ;;  %v1922_v29 = vld [vmem:[#allocation5 + $0x220] ss:$24 sps:$4 sm:$0xff]  }
  0x45   :  { %682 = vmatprep.subr.bf16.mxu0 %v1835_v31  ;;  %v1927_v30 = vld [vmem:[#allocation5 + $0x1f4] ss:$24 sps:$4 sm:$0xff]   ;;  %v1925_v31 = vld [vmem:[#allocation5 + $0x1f0] ss:$24 sps:$4 sm:$0xff]   ;;  %v1978_v0 = vld [vmem:[#allocation5 + $0x304] ss:$24 sps:$4 sm:$0xff]  }
  0x46   :  { %722 = vmatpush1.bf16.msra.mxu1 %v1840_v32  ;;  %v1930_v32 = vld [vmem:[#allocation5 + $0x1c4] ss:$24 sps:$4 sm:$0xff]   ;;  %s2170_s30 = scalar_lea.vmem %s1581_s2, 128 }
  0x47   :  { %723 = vmatprep.subr.bf16.mxu1 %v1844_v34  ;;  %v1933_v34 = vld [vmem:[#allocation5 + $0x194] ss:$24 sps:$4 sm:$0xff]   ;;  %p2171_p1 = scmp.ne.s32.totalorder %s1581_s2, %s2170_s30  ;;  %p2176_p3 = scmp.lt.s32.totalorder %s2170_s30, %s2170_s30 }
  0x48   :  { %683 = vmatpush2.bf16.msra.mxu0 %v1837_v33  ;;  %v1928_v33 = vld [vmem:[#allocation5 + $0x1c0] ss:$24 sps:$4 sm:$0xff]   ;;  %v1951_v45 = vld [vmem:[#allocation5 + $0x3fc] ss:$24 sps:$4 sm:$0xff]  }
  0x49   :  { %684 = vmatprep.subr.bf16.mxu0 %v1841_v35  ;;  %v1931_v35 = vld [vmem:[#allocation5 + $0x190] ss:$24 sps:$4 sm:$0xff]   ;;  %p2177_p4 = por %p2176_p3, %p2175_p2 }
  0x4a   :  { %724 = vmatpush2.bf16.msra.mxu1 %v1846_v36  ;;  %v1934_v36 = vld [vmem:[#allocation5 + $0x450] ss:$24 sps:$4 sm:$0xff]  }
  0x4b   :  { %725 = vmatprep.subr.bf16.mxu1 %v1850_v38  ;;  %v1937_v38 = vld [vmem:[#allocation5 + $0x458] ss:$24 sps:$4 sm:$0xff]   ;;  %p2178_p5 = pnand %p2177_p4, %p2171_p1 }
  0x4c   :  { %685 = vmatpush2.bf16.msra.mxu0 %v1843_v37  ;;  %v1936_v37 = vld [vmem:[#allocation5 + $0x454] ss:$24 sps:$4 sm:$0xff]  }
  0x4d   :  { %686 = vmatprep.subr.bf16.mxu0 %v1847_v39  ;;  %v1939_v39 = vld [vmem:[#allocation5 + $0x45c] ss:$24 sps:$4 sm:$0xff]  }
  0x4e   :  { %726 = vmatpush2.bf16.msra.mxu1 %v1852_v40  ;;  %v1942_v40 = vld [vmem:[#allocation5 + $0x424] ss:$24 sps:$4 sm:$0xff]  }
  0x4f   :  { %727 = vmatprep.subr.bf16.mxu1 %v1856_v42  ;;  %v1940_v42 = vld [vmem:[#allocation5 + $0x420] ss:$24 sps:$4 sm:$0xff]  }
  0x50   :  { %687 = vmatpush2.bf16.msra.mxu0 %v1849_v41  ;;  %v1945_v41 = vld [vmem:[#allocation5 + $0x42c] ss:$24 sps:$4 sm:$0xff]  }
  0x51   :  { %688 = vmatprep.subr.bf16.mxu0 %v1853_v43  ;;  %v1943_v43 = vld [vmem:[#allocation5 + $0x428] ss:$24 sps:$4 sm:$0xff]  }
  0x52   :  { %728 = vmatpush2.bf16.msra.mxu1 %v1858_v46  ;;  %v1946_v46 = vld [vmem:[#allocation5 + $0x3f0] ss:$24 sps:$4 sm:$0xff]  }
  0x53   :  { %729 = vmatprep.subr.bf16.mxu1 %v1862_v48  ;;  %v1954_v48 = vld [vmem:[#allocation5 + $0x3c4] ss:$24 sps:$4 sm:$0xff]  }
  0x54   :  { %689 = vmatpush2.bf16.msra.mxu0 %v1855_v44  ;;  %v1948_v44 = vld [vmem:[#allocation5 + $0x3f4] ss:$24 sps:$4 sm:$0xff]  }
  0x55   :  { %690 = vmatprep.subr.bf16.mxu0 %v1859_v49  ;;  %v1957_v49 = vld [vmem:[#allocation5 + $0x3cc] ss:$24 sps:$4 sm:$0xff]  }
  0x56   :  { %730 = vmatpush2.bf16.msra.mxu1 %v1864_v51  ;;  %v1955_v51 = vld [vmem:[#allocation5 + $0x3c8] ss:$24 sps:$4 sm:$0xff]  }
  0x57   :  { %731 = vmatprep.subr.bf16.mxu1 %v1868_v52  ;;  %v1960_v52 = vld [vmem:[#allocation5 + $0x394] ss:$24 sps:$4 sm:$0xff]  }
  0x58   :  { %691 = vmatpush2.bf16.msra.mxu0 %v1861_v50  ;;  %v1952_v50 = vld [vmem:[#allocation5 + $0x3c0] ss:$24 sps:$4 sm:$0xff]  }
  0x59   :  { %692 = vmatprep.subr.bf16.mxu0 %v1865_v53  ;;  %v1963_v53 = vld [vmem:[#allocation5 + $0x39c] ss:$24 sps:$4 sm:$0xff]  }
  0x5a   :  { %732 = vmatpush2.bf16.msra.mxu1 %v1870_v55  ;;  %v1961_v55 = vld [vmem:[#allocation5 + $0x398] ss:$24 sps:$4 sm:$0xff]  }
  0x5b   :  { %733 = vmatprep.subr.bf16.mxu1 %v1874_v56  ;;  %v1966_v56 = vld [vmem:[#allocation5 + $0x364] ss:$24 sps:$4 sm:$0xff]  }
  0x5c   :  { %693 = vmatpush2.bf16.msra.mxu0 %v1867_v54  ;;  %v1958_v54 = vld [vmem:[#allocation5 + $0x390] ss:$24 sps:$4 sm:$0xff]  }
  0x5d   :  { %694 = vmatprep.subr.bf16.mxu0 %v1871_v57  ;;  %v1969_v57 = vld [vmem:[#allocation5 + $0x36c] ss:$24 sps:$4 sm:$0xff]  }
  0x5e   :  { %734 = vmatpush2.bf16.msra.mxu1 %v1876_v59  ;;  %v1967_v59 = vld [vmem:[#allocation5 + $0x368] ss:$24 sps:$4 sm:$0xff]  }
  0x5f   :  { %735 = vmatprep.subr.bf16.mxu1 %v1880_v60  ;;  %v1972_v60 = vld [vmem:[#allocation5 + $0x334] ss:$24 sps:$4 sm:$0xff]  }
  0x60   :  { %695 = vmatpush2.bf16.msra.mxu0 %v1873_v58  ;;  %v1964_v58 = vld [vmem:[#allocation5 + $0x360] ss:$24 sps:$4 sm:$0xff]  }
  0x61   :  { %696 = vmatprep.subr.bf16.mxu0 %v1877_v61  ;;  %v1975_v61 = vld [vmem:[#allocation5 + $0x33c] ss:$24 sps:$4 sm:$0xff]  }
  0x62   :  { %736 = vmatpush2.bf16.msra.mxu1 %v1882_v63  ;;  %v1973_v63 = vld [vmem:[#allocation5 + $0x338] ss:$24 sps:$4 sm:$0xff]  }
  0x63   :  { %737 = vmatprep.subr.bf16.mxu1 %v1886_v1  ;;  %v1981_v1 = vld [vmem:[#allocation5 + $0x30c] ss:$24 sps:$4 sm:$0xff]  }
  0x64   :  { %697 = vmatpush2.bf16.msra.mxu0 %v1879_v62  ;;  %v1970_v62 = vld [vmem:[#allocation5 + $0x330] ss:$24 sps:$4 sm:$0xff]  }
  0x65   :  { %748 = vmatprep.subr.bf16.mxu0 %v1885_v2  ;;  %v1976_v2 = vld [vmem:[#allocation5 + $0x300] ss:$24 sps:$4 sm:$0xff]  }
  0x66   :  { %738 = vmatpush2.bf16.msra.mxu1 %v1888_v4  ;;  %v1984_v4 = vld [vmem:[#allocation5 + $0x5d4] ss:$24 sps:$4 sm:$0xff]  }
  0x67   :  { %699 = vmatmul.mubr.bf16.vlgmr.msra.gmra.mxu0 %v2233_v3  ;;  %1425 = vmatprep.subr.bf16.mxu1 %v1936_v37 }
  0x68   :  { %749 = vmatpush1.bf16.msra.mxu0 %v1883_v5  ;;  %780 = vmatprep.mubr.bf16.mxu0 %v57_v47  ;;  %v1949_v47 = vld [vmem:[#allocation5 + $0x3f8] ss:$24 sps:$4 sm:$0xff]   ;;  %v1987_v5 = vld [vmem:[#allocation5 + $0x5dc] ss:$24 sps:$4 sm:$0xff]  }
  0x69   :  { %750 = vmatprep.subr.bf16.mxu0 %v1891_v6  ;;  %740 = vmatmul.mubr.bf16.vlgmr.msra.gmra.mxu1 %v2233_v3  ;;  %v1982_v6 = vld [vmem:[#allocation5 + $0x5d0] ss:$24 sps:$4 sm:$0xff]  }
  0x6a   :  { %1426 = vmatpush1.bf16.msra.mxu1 %v1934_v36  ;;  %v2032_v36 = vld [vmem:[#allocation5 + $0x464] ss:$24 sps:$4 sm:$0xff]  }
  0x6b   :  { %1427 = vmatprep.subr.bf16.mxu1 %v1942_v40 }
  0x6c   :  { %751 = vmatpush1.bf16.msra.mxu0 %v1889_v7  ;;  %v1985_v7 = vld [vmem:[#allocation5 + $0x5d8] ss:$24 sps:$4 sm:$0xff]  }
  0x6d   :  { %752 = vmatprep.subr.bf16.mxu0 %v1894_v8  ;;  %v1990_v8 = vld [vmem:[#allocation5 + $0x5a4] ss:$24 sps:$4 sm:$0xff]  }
  0x6e   :  { %1428 = vmatpush1.bf16.msra.mxu1 %v1940_v42 }
  0x6f   :  { %1429 = vmatprep.subr.bf16.mxu1 %v1948_v44 }
  0x70   :  { %753 = vmatpush1.bf16.msra.mxu0 %v1892_v9  ;;  %v1988_v9 = vld [vmem:[#allocation5 + $0x5a0] ss:$24 sps:$4 sm:$0xff]  }
  0x71   :  { %754 = vmatprep.subr.bf16.mxu0 %v1897_v10  ;;  %v1993_v10 = vld [vmem:[#allocation5 + $0x5ac] ss:$24 sps:$4 sm:$0xff]  }
  0x72   :  { %1430 = vmatpush1.bf16.msra.mxu1 %v1946_v46 }
  0x73   :  { %1431 = vmatprep.subr.bf16.mxu1 %v1954_v48  ;;  %v154_v48 = vld [vmem:[#allocation7] sm:$0x3f] }
  0x74   :  { %755 = vmatpush1.bf16.msra.mxu0 %v1895_v11  ;;  %v1991_v11 = vld [vmem:[#allocation5 + $0x5a8] ss:$24 sps:$4 sm:$0xff]  }
  0x75   :  { %756 = vmatprep.subr.bf16.mxu0 %v1900_v12  ;;  %v1996_v12 = vld [vmem:[#allocation5 + $0x574] ss:$24 sps:$4 sm:$0xff]  }
  0x76   :  { %1432 = vmatpush1.bf16.msra.mxu1 %v1952_v50 }
  0x77   :  { %1433 = vmatprep.subr.bf16.mxu1 %v1960_v52 }
  0x78   :  { %757 = vmatpush1.bf16.msra.mxu0 %v1898_v13  ;;  %v1994_v13 = vld [vmem:[#allocation5 + $0x570] ss:$24 sps:$4 sm:$0xff]  }
  0x79   :  { %758 = vmatprep.subr.bf16.mxu0 %v1903_v14  ;;  %v1999_v14 = vld [vmem:[#allocation5 + $0x57c] ss:$24 sps:$4 sm:$0xff]  }
  0x7a   :  { %1434 = vmatpush1.bf16.msra.mxu1 %v1958_v54 }
  0x7b   :  { %1435 = vmatprep.subr.bf16.mxu1 %v1966_v56 }
  0x7c   :  { %759 = vmatpush1.bf16.msra.mxu0 %v1901_v15  ;;  %v1997_v15 = vld [vmem:[#allocation5 + $0x578] ss:$24 sps:$4 sm:$0xff]  }
  0x7d   :  { %760 = vmatprep.subr.bf16.mxu0 %v1906_v16  ;;  %v2002_v16 = vld [vmem:[#allocation5 + $0x544] ss:$24 sps:$4 sm:$0xff]  }
  0x7e   :  { %1436 = vmatpush1.bf16.msra.mxu1 %v1964_v58 }
  0x7f   :  { %1437 = vmatprep.subr.bf16.mxu1 %v1972_v60 }
  0x80   :  { %761 = vmatpush1.bf16.msra.mxu0 %v1904_v17  ;;  %v2000_v17 = vld [vmem:[#allocation5 + $0x540] ss:$24 sps:$4 sm:$0xff]  }
  0x81   :  { %762 = vmatprep.subr.bf16.mxu0 %v1909_v18  ;;  %v2005_v18 = vld [vmem:[#allocation5 + $0x54c] ss:$24 sps:$4 sm:$0xff]  }
  0x82   :  { %1438 = vmatpush1.bf16.msra.mxu1 %v1970_v62 }
  0x83   :  { %1439 = vmatprep.subr.bf16.mxu1 %v1978_v0 }
  0x84   :  { %763 = vmatpush1.bf16.msra.mxu0 %v1907_v19  ;;  %v2003_v19 = vld [vmem:[#allocation5 + $0x548] ss:$24 sps:$4 sm:$0xff]  }
  0x85   :  { %764 = vmatprep.subr.bf16.mxu0 %v1912_v20  ;;  %v2008_v20 = vld [vmem:[#allocation5 + $0x514] ss:$24 sps:$4 sm:$0xff]  }
  0x86   :  { %1440 = vmatpush1.bf16.msra.mxu1 %v1976_v2 }
  0x87   :  { %1441 = vmatprep.subr.bf16.mxu1 %v1984_v4 }
  0x88   :  { %765 = vmatpush2.bf16.msra.mxu0 %v1910_v21  ;;  %v2006_v21 = vld [vmem:[#allocation5 + $0x510] ss:$24 sps:$4 sm:$0xff]  }
  0x89   :  { %766 = vmatprep.subr.bf16.mxu0 %v1915_v22  ;;  %v2011_v22 = vld [vmem:[#allocation5 + $0x51c] ss:$24 sps:$4 sm:$0xff]  }
  0x8a   :  { %1442 = vmatpush2.bf16.msra.mxu1 %v1982_v6 }
  0x8b   :  { %1443 = vmatprep.subr.bf16.mxu1 %v1990_v8 }
  0x8c   :  { %767 = vmatpush2.bf16.msra.mxu0 %v1913_v23  ;;  %v2009_v23 = vld [vmem:[#allocation5 + $0x518] ss:$24 sps:$4 sm:$0xff]  }
  0x8d   :  { %768 = vmatprep.subr.bf16.mxu0 %v1918_v24  ;;  %v2014_v24 = vld [vmem:[#allocation5 + $0x4e4] ss:$24 sps:$4 sm:$0xff]  }
  0x8e   :  { %1444 = vmatpush2.bf16.msra.mxu1 %v1988_v9 }
  0x8f   :  { %1445 = vmatprep.subr.bf16.mxu1 %v1996_v12 }
  0x90   :  { %769 = vmatpush2.bf16.msra.mxu0 %v1916_v25  ;;  %v2012_v25 = vld [vmem:[#allocation5 + $0x4e0] ss:$24 sps:$4 sm:$0xff]  }
  0x91   :  { %770 = vmatprep.subr.bf16.mxu0 %v1921_v26  ;;  %v2017_v26 = vld [vmem:[#allocation5 + $0x4ec] ss:$24 sps:$4 sm:$0xff]  }
  0x92   :  { %1446 = vmatpush2.bf16.msra.mxu1 %v1994_v13 }
  0x93   :  { %1447 = vmatprep.subr.bf16.mxu1 %v2002_v16 }
  0x94   :  { %771 = vmatpush2.bf16.msra.mxu0 %v1919_v27  ;;  %v2015_v27 = vld [vmem:[#allocation5 + $0x4e8] ss:$24 sps:$4 sm:$0xff]  }
  0x95   :  { %772 = vmatprep.subr.bf16.mxu0 %v1924_v28  ;;  %v2020_v28 = vld [vmem:[#allocation5 + $0x4b4] ss:$24 sps:$4 sm:$0xff]  }
  0x96   :  { %1448 = vmatpush2.bf16.msra.mxu1 %v2000_v17 }
  0x97   :  { %1449 = vmatprep.subr.bf16.mxu1 %v2008_v20 }
  0x98   :  { %773 = vmatpush2.bf16.msra.mxu0 %v1922_v29  ;;  %v2018_v29 = vld [vmem:[#allocation5 + $0x4b0] ss:$24 sps:$4 sm:$0xff]  }
  0x99   :  { %774 = vmatprep.subr.bf16.mxu0 %v1927_v30  ;;  %v2023_v30 = vld [vmem:[#allocation5 + $0x4bc] ss:$24 sps:$4 sm:$0xff]  }
  0x9a   :  { %1450 = vmatpush2.bf16.msra.mxu1 %v2006_v21 }
  0x9b   :  { %1451 = vmatprep.subr.bf16.mxu1 %v2014_v24 }
  0x9c   :  { %775 = vmatpush2.bf16.msra.mxu0 %v1925_v31  ;;  %v2021_v31 = vld [vmem:[#allocation5 + $0x4b8] ss:$24 sps:$4 sm:$0xff]  }
  0x9d   :  { %776 = vmatprep.subr.bf16.mxu0 %v1930_v32  ;;  %v2024_v32 = vld [vmem:[#allocation5 + $0x480] ss:$24 sps:$4 sm:$0xff]  }
  0x9e   :  { %1452 = vmatpush2.bf16.msra.mxu1 %v2012_v25 }
  0x9f   :  { %1453 = vmatprep.subr.bf16.mxu1 %v2020_v28 }
  0xa0   :  { %777 = vmatpush2.bf16.msra.mxu0 %v1928_v33  ;;  %v2026_v33 = vld [vmem:[#allocation5 + $0x484] ss:$24 sps:$4 sm:$0xff]  }
  0xa1   :  { %778 = vmatprep.subr.bf16.mxu0 %v1933_v34  ;;  %v2027_v34 = vld [vmem:[#allocation5 + $0x488] ss:$24 sps:$4 sm:$0xff]  }
  0xa2   :  { %1454 = vmatpush2.bf16.msra.mxu1 %v2018_v29 }
  0xa3   :  { %1455 = vmatprep.subr.bf16.mxu1 %v2026_v33  ;;  %v2035_v33 = vld [vmem:[#allocation5 + $0x434] ss:$24 sps:$4 sm:$0xff]  }
  0xa4   :  { %779 = vmatpush2.bf16.msra.mxu0 %v1931_v35  ;;  %v2029_v35 = vld [vmem:[#allocation5 + $0x48c] ss:$24 sps:$4 sm:$0xff]  }
  0xa5   :  { %1466 = vmatprep.subr.bf16.mxu0 %v1939_v39 }
  0xa6   :  { %1456 = vmatpush2.bf16.msra.mxu1 %v2024_v32 }
  0xa7   :  { %781 = vmatmul.mubr.bf16.vlgmr.msra.gmra.mxu0 %v2233_v3  ;;  %v1979_v3 = vld [vmem:[#allocation5 + $0x308] ss:$24 sps:$4 sm:$0xff]   ;;  %1507 = vmatprep.subr.bf16.mxu1 %v2032_v36 }
  0xa8   :  { %1467 = vmatpush1.bf16.msra.mxu0 %v1937_v38  ;;  %v2036_v36 = vld [vmem:[#allocation5 + $0x400] ss:$24 sps:$4 sm:$0xff]  }
  0xa9   :  { %1468 = vmatprep.subr.bf16.mxu0 %v1945_v41 }
  0xac   :  { %1469 = vmatpush1.bf16.msra.mxu0 %v1943_v43 }
  0xad   :  { %1470 = vmatprep.subr.bf16.mxu0 %v1951_v45  ;;  %v156_v45 = vlaneseq }
  0xaf   :  { %v2238_v46 = vshrl.u32 %v156_v45, 7  ;;  %v2053_v45 = vld [vmem:[#allocation5 + $0x314] ss:$24 sps:$4 sm:$0xff]  }
  0xb0   :  { %1471 = vmatpush1.bf16.msra.mxu0 %v1949_v47 }
  0xb1   :  { %1472 = vmatprep.subr.bf16.mxu0 %v1957_v49  ;;  %v158_v47 = vsub.s32 0, %v2238_v46  ;;  %v162_v49 = vsub.s32 1, %v2238_v46  ;;  %v174_v62 = vsub.s32 4, %v2238_v46  ;;  %v178_v0 = vsub.s32 5, %v2238_v46 }
  0xb3   :  { %v159_v50 = vrot.slane %v154_v48, %v158_v47  ;;  %v175_v2 = vrot.slane %v154_v48, %v174_v62 }
  0xb4   :  { %1473 = vmatpush1.bf16.msra.mxu0 %v1955_v51  ;;  %v163_v51 = vrot.slane %v154_v48, %v162_v49 }
  0xb5   :  { %1474 = vmatprep.subr.bf16.mxu0 %v1963_v53 }
  0xb8   :  { %1475 = vmatpush1.bf16.msra.mxu0 %v1961_v55  ;;  %v166_v55 = vsub.s32 2, %v2238_v46 }
  0xb9   :  { %1476 = vmatprep.subr.bf16.mxu0 %v1969_v57  ;;  %v170_v57 = vsub.s32 3, %v2238_v46 }
  0xba   :  { %v167_v58 = vrot.slane %v154_v48, %v166_v55 }
  0xbc   :  { %1477 = vmatpush1.bf16.msra.mxu0 %v1967_v59  ;;  %v171_v59 = vrot.slane %v154_v48, %v170_v57 }
  0xbd   :  { %1478 = vmatprep.subr.bf16.mxu0 %v1975_v61 }
  0xc0   :  { %1479 = vmatpush1.bf16.msra.mxu0 %v1973_v63 }
  0xc1   :  { %1480 = vmatprep.subr.bf16.mxu0 %v1981_v1 }
  0xc4   :  { %1481 = vmatpush1.bf16.msra.mxu0 %v1979_v3 }
  0xc5   :  { %1482 = vmatprep.subr.bf16.mxu0 %v1987_v5  ;;  %v179_v5 = vrot.slane %v154_v48, %v178_v0  ;;  %v2051_v48 = vld [vmem:[#allocation5 + $0x310] ss:$24 sps:$4 sm:$0xff]  }
  0xc8   :  { %1483 = vmatpush2.bf16.msra.mxu0 %v1985_v7 }
  0xc9   :  { %1484 = vmatprep.subr.bf16.mxu0 %v1993_v10 }
  0xcc   :  { %1485 = vmatpush2.bf16.msra.mxu0 %v1991_v11 }
  0xcd   :  { %1486 = vmatprep.subr.bf16.mxu0 %v1999_v14 }
  0xd0   :  { %1487 = vmatpush2.bf16.msra.mxu0 %v1997_v15 }
  0xd1   :  { %1488 = vmatprep.subr.bf16.mxu0 %v2005_v18 }
  0xd4   :  { %1489 = vmatpush2.bf16.msra.mxu0 %v2003_v19 }
  0xd5   :  { %1490 = vmatprep.subr.bf16.mxu0 %v2011_v22 }
  0xd8   :  { %1491 = vmatpush2.bf16.msra.mxu0 %v2009_v23 }
  0xd9   :  { %1492 = vmatprep.subr.bf16.mxu0 %v2017_v26 }
  0xdc   :  { %1493 = vmatpush2.bf16.msra.mxu0 %v2015_v27 }
  0xdd   :  { %1494 = vmatprep.subr.bf16.mxu0 %v2023_v30 }
  0xe0   :  { %1495 = vmatpush2.bf16.msra.mxu0 %v2021_v31  ;;  %v2030_v31 = vld [vmem:[#allocation5 + $0x460] ss:$24 sps:$4 sm:$0xff]  }
  0xe1   :  { %1496 = vmatprep.subr.bf16.mxu0 %v2029_v35  ;;  %v2038_v35 = vld [vmem:[#allocation5 + $0x404] ss:$24 sps:$4 sm:$0xff]  }
  0xe4   :  { %1497 = vmatpush2.bf16.msra.mxu0 %v2027_v34  ;;  %v2033_v34 = vld [vmem:[#allocation5 + $0x430] ss:$24 sps:$4 sm:$0xff]  }
 0x127   :  { %v700_v37 = vpop.f32.mrf.mxu0 }
 0x128   :  { %v701_v52 = vadd.f32 %v700_v37, %v159_v50  ;;  %v2041_v37 = vld [vmem:[#allocation5 + $0x3d4] ss:$24 sps:$4 sm:$0xff]   ;;  %v2056_v50 = vld [vmem:[#allocation5 + $0x5e4] ss:$24 sps:$4 sm:$0xff]  }
 0x129   :  { %v702_v38 = vpop.f32.mrf.mxu0  ;;  %v741_v39 = vpop.f32.mrf.mxu1 }
 0x12a   :  { %v703_v53 = vadd.f32 %v702_v38, %v163_v51  ;;  %v789_v54 = vmul.f32 0.5, %v701_v52  ;;  %v742_v60 = vadd.f32 %v741_v39, %v167_v58  ;;  %v2039_v38 = vld [vmem:[#allocation5 + $0x3d0] ss:$24 sps:$4 sm:$0xff]   ;;  %v2044_v39 = vld [vmem:[#allocation5 + $0x3a4] ss:$24 sps:$4 sm:$0xff]  }
 0x12b   :  { %v704_v40 = vpop.f32.mrf.mxu0  ;;  %v743_v41 = vpop.f32.mrf.mxu1  ;;  %v2054_v51 = vld [vmem:[#allocation5 + $0x5e0] ss:$24 sps:$4 sm:$0xff]   ;;  %v2059_v52 = vld [vmem:[#allocation5 + $0x5b4] ss:$24 sps:$4 sm:$0xff]  }
 0x12c   :  { %v790_v56 = vmul.f32 0.5, %v703_v53  ;;  %2078 = vtanh.f32 %v789_v54  ;;  %v744_v61 = vadd.f32 %v743_v41, %v171_v59  ;;  %v2042_v40 = vld [vmem:[#allocation5 + $0x3a0] ss:$24 sps:$4 sm:$0xff]   ;;  %v2047_v41 = vld [vmem:[#allocation5 + $0x374] ss:$24 sps:$4 sm:$0xff]  }
 0x12d   :  { %v705_v42 = vpop.f32.mrf.mxu0  ;;  %v745_v43 = vpop.f32.mrf.mxu1  ;;  %v2057_v53 = vld [vmem:[#allocation5 + $0x5b0] ss:$24 sps:$4 sm:$0xff]   ;;  %v2062_v54 = vld [vmem:[#allocation5 + $0x584] ss:$24 sps:$4 sm:$0xff]   ;;  %v2065_v58 = vld [vmem:[#allocation5 + $0x554] ss:$24 sps:$4 sm:$0xff]  }
 0x12e   :  { %2080 = vtanh.f32 %v790_v56  ;;  %v2045_v42 = vld [vmem:[#allocation5 + $0x370] ss:$24 sps:$4 sm:$0xff]   ;;  %v2050_v43 = vld [vmem:[#allocation5 + $0x344] ss:$24 sps:$4 sm:$0xff]   ;;  %v2060_v56 = vld [vmem:[#allocation5 + $0x580] ss:$24 sps:$4 sm:$0xff]  }
 0x12f   :  { %v746_v44 = vpop.f32.mrf.mxu1  ;;  %2082 = vtanh.f32 %v742_v60  ;;  %v2063_v59 = vld [vmem:[#allocation5 + $0x550] ss:$24 sps:$4 sm:$0xff]   ;;  %v2068_v60 = vld [vmem:[#allocation5 + $0x524] ss:$24 sps:$4 sm:$0xff]  }
 0x130   :  { %2084 = vtanh.f32 %v744_v61  ;;  %v2048_v44 = vld [vmem:[#allocation5 + $0x340] ss:$24 sps:$4 sm:$0xff]  }
 0x131   :  { %v2066_v61 = vld [vmem:[#allocation5 + $0x520] ss:$24 sps:$4 sm:$0xff]  }
 0x139   :  { %v2079_v63 = vpop.eup %2078 }
 0x13a   :  { %v793_v3 = vmul.f32 0.5, %v2079_v63  ;;  %v2071_v63 = vld [vmem:[#allocation5 + $0x4f4] ss:$24 sps:$4 sm:$0xff]  }
 0x13b   :  { %v2081_v1 = vpop.eup %2080 }
 0x13c   :  { %v794_v4 = vmul.f32 0.5, %v2081_v1  ;;  %v795_v8 = vadd.f32 0.5, %v793_v3  ;;  %v2083_v10 = vpop.eup %2082  ;;  %v2069_v1 = vld [vmem:[#allocation5 + $0x4f0] ss:$24 sps:$4 sm:$0xff]   ;;  %v2072_v3 = vld [vmem:[#allocation5 + $0x4c0] ss:$24 sps:$4 sm:$0xff]  }
 0x13d   :  { %v2085_v14 = vpop.eup %2084 }
 0x13e   :  { %v796_v11 = vadd.f32 0.5, %v794_v4  ;;  %v799_v17 = vmul.f32 %v2083_v10, %v795_v8  ;;  %v2077_v4 = vld [vmem:[#allocation5 + $0x494] ss:$24 sps:$4 sm:$0xff]  }
 0x140   :  { %v800_v19 = vmul.f32 %v2085_v14, %v796_v11  ;;  %v913_v14 = vld [vmem:[#allocation7 + $0x6] sm:$0x3f] }
 0x167   :  { %v782_v6 = vpop.f32.mrf.mxu0 }
 0x168   :  { %v783_v7 = vadd.f32 %v782_v6, %v175_v2  ;;  %v2074_v2 = vld [vmem:[#allocation5 + $0x4c4] ss:$24 sps:$4 sm:$0xff]  }
 0x169   :  { %v784_v9 = vpop.f32.mrf.mxu0 }
 0x16a   :  { %v801_v12 = vmul.f32 0.5, %v783_v7  ;;  %v785_v13 = vadd.f32 %v784_v9, %v179_v5  ;;  %v2075_v5 = vld [vmem:[#allocation5 + $0x490] ss:$24 sps:$4 sm:$0xff]  }
 0x16b   :  { %v786_v15 = vpop.f32.mrf.mxu0 }
 0x16c   :  { %2086 = vtanh.f32 %v801_v12  ;;  %v802_v16 = vmul.f32 0.5, %v785_v13  ;;  %v918_v15 = vrot.slane %v913_v14, %v158_v47 }
 0x16d   :  { %v787_v18 = vpop.f32.mrf.mxu0 }
 0x16e   :  { %2088 = vtanh.f32 %v802_v16  ;;  %v922_v16 = vrot.slane %v913_v14, %v162_v49  ;;  %v934_v49 = vrot.slane %v913_v14, %v174_v62 }
 0x16f   :  { %2090 = vtanh.f32 %v799_v17 }
 0x170   :  { %2092 = vtanh.f32 %v800_v19 }
 0x179   :  { %v2087_v20 = vpop.eup %2086 }
 0x17a   :  { %v805_v21 = vmul.f32 0.5, %v2087_v20 }
 0x17b   :  { %v2089_v22 = vpop.eup %2088 }
 0x17c   :  { %v807_v23 = vadd.f32 0.5, %v805_v21  ;;  %v806_v24 = vmul.f32 0.5, %v2089_v22  ;;  %v2091_v25 = vpop.eup %2090  ;;  %v926_v21 = vrot.slane %v913_v14, %v166_v55  ;;  %v930_v22 = vrot.slane %v913_v14, %v170_v57 }
 0x17d   :  { %v2093_v27 = vpop.eup %2092 }
 0x17e   :  { %v808_v26 = vadd.f32 0.5, %v806_v24  ;;  %v811_v28 = vmul.f32 %v2091_v25, %v807_v23 }
 0x180   :  { %v812_v29 = vmul.f32 %v2093_v27, %v808_v26  ;;  %v2258_v32 = vpack.c.bf16 %v811_v28, %v811_v28  ;;  %v938_v28 = vrot.slane %v913_v14, %v178_v0 }
 0x182   :  { %v814_v30 = vpack.c.bf16 %v812_v29, %v812_v29 }
 0x184   :  { %1457 = vmatprep.mubr.bf16.mxu1 %v814_v30  ;;  %1498 = vmatprep.mubr.bf16.mxu0 %v814_v30 }
 0x185   :  { %1458 = vmatmul.mubr.bf16.vlgmr.msra.gmra.mxu1 %v2258_v32  ;;  %1499 = vmatmul.mubr.bf16.vlgmr.msra.gmra.mxu0 %v2258_v32 }
 0x186   :  { %1508 = vmatpush1.bf16.msra.mxu1 %v2030_v31  ;;  %1539 = vmatprep.mubr.bf16.mxu1 %v814_v30 }
 0x187   :  { %1509 = vmatprep.subr.bf16.mxu1 %v2035_v33 }
 0x18a   :  { %1510 = vmatpush1.bf16.msra.mxu1 %v2033_v34 }
 0x18b   :  { %1511 = vmatprep.subr.bf16.mxu1 %v2038_v35 }
 0x18e   :  { %1512 = vmatpush1.bf16.msra.mxu1 %v2036_v36 }
 0x18f   :  { %1513 = vmatprep.subr.bf16.mxu1 %v2041_v37 }
 0x192   :  { %1514 = vmatpush1.bf16.msra.mxu1 %v2039_v38 }
 0x193   :  { %1515 = vmatprep.subr.bf16.mxu1 %v2044_v39 }
 0x196   :  { %1516 = vmatpush1.bf16.msra.mxu1 %v2042_v40 }
 0x197   :  { %1517 = vmatprep.subr.bf16.mxu1 %v2047_v41 }
 0x19a   :  { %1518 = vmatpush1.bf16.msra.mxu1 %v2045_v42 }
 0x19b   :  { %1519 = vmatprep.subr.bf16.mxu1 %v2050_v43 }
 0x19e   :  { %1520 = vmatpush1.bf16.msra.mxu1 %v2048_v44 }
 0x19f   :  { %1521 = vmatprep.subr.bf16.mxu1 %v2053_v45 }
 0x1a2   :  { %1522 = vmatpush1.bf16.msra.mxu1 %v2051_v48 }
 0x1a3   :  { %1523 = vmatprep.subr.bf16.mxu1 %v2056_v50 }
 0x1a6   :  { %1524 = vmatpush2.bf16.msra.mxu1 %v2054_v51 }
 0x1a7   :  { %1525 = vmatprep.subr.bf16.mxu1 %v2059_v52 }
 0x1aa   :  { %1526 = vmatpush2.bf16.msra.mxu1 %v2057_v53 }
 0x1ab   :  { %1527 = vmatprep.subr.bf16.mxu1 %v2062_v54 }
 0x1ae   :  { %1528 = vmatpush2.bf16.msra.mxu1 %v2060_v56 }
 0x1af   :  { %1529 = vmatprep.subr.bf16.mxu1 %v2065_v58 }
 0x1b2   :  { %1530 = vmatpush2.bf16.msra.mxu1 %v2063_v59 }
 0x1b3   :  { %1531 = vmatprep.subr.bf16.mxu1 %v2068_v60 }
 0x1b6   :  { %1532 = vmatpush2.bf16.msra.mxu1 %v2066_v61 }
 0x1b7   :  { %1533 = vmatprep.subr.bf16.mxu1 %v2071_v63 }
 0x1ba   :  { %1534 = vmatpush2.bf16.msra.mxu1 %v2069_v1 }
 0x1bb   :  { %1535 = vmatprep.subr.bf16.mxu1 %v2074_v2 }
 0x1be   :  { %1536 = vmatpush2.bf16.msra.mxu1 %v2072_v3 }
 0x1bf   :  { %1537 = vmatprep.subr.bf16.mxu1 %v2077_v4 }
 0x1c2   :  { %1538 = vmatpush2.bf16.msra.mxu1 %v2075_v5 }
 0x1c5   :  { %1540 = vmatmul.mubr.bf16.vlgmr.msra.gmra.mxu1 %v2258_v32 }
 0x245   :  { %v1459_v6 = vpop.f32.mrf.mxu1  ;;  %v1500_v7 = vpop.f32.mrf.mxu0 }
 0x246   :  { %v1460_v17 = vadd.f32 %v1459_v6, %v918_v15  ;;  %v1501_v23 = vadd.f32 %v1500_v7, %v926_v21 }
 0x247   :  { %v1461_v8 = vpop.f32.mrf.mxu1  ;;  %v1502_v9 = vpop.f32.mrf.mxu0 }
 0x248   :  { %v1462_v18 = vadd.f32 %v1461_v8, %v922_v16  ;;  %v1548_v19 = vmul.f32 0.5, %v1460_v17  ;;  %v1503_v24 = vadd.f32 %v1502_v9, %v930_v22 }
 0x249   :  { %v1463_v10 = vpop.f32.mrf.mxu1  ;;  %v1504_v11 = vpop.f32.mrf.mxu0 }
 0x24a   :  { %v1549_v20 = vmul.f32 0.5, %v1462_v18  ;;  %2094 = vtanh.f32 %v1548_v19 }
 0x24b   :  { %v1464_v12 = vpop.f32.mrf.mxu1  ;;  %v1505_v13 = vpop.f32.mrf.mxu0 }
 0x24c   :  { %2096 = vtanh.f32 %v1549_v20 }
 0x24d   :  { %2098 = vtanh.f32 %v1501_v23 }
 0x24e   :  { %2100 = vtanh.f32 %v1503_v24 }
 0x257   :  { %v2095_v47 = vpop.eup %2094 }
 0x258   :  { %v1552_v26 = vmul.f32 0.5, %v2095_v47 }
 0x259   :  { %v2097_v25 = vpop.eup %2096 }
 0x25a   :  { %v1553_v27 = vmul.f32 0.5, %v2097_v25  ;;  %v1554_v55 = vadd.f32 0.5, %v1552_v26  ;;  %v2099_v35 = vpop.eup %2098 }
 0x25b   :  { %v2101_v37 = vpop.eup %2100 }
 0x25c   :  { %v1555_v32 = vadd.f32 0.5, %v1553_v27  ;;  %v1558_v38 = vmul.f32 %v2099_v35, %v1554_v55 }
 0x25e   :  { %v1559_v62 = vmul.f32 %v2101_v37, %v1555_v32 }
 0x285   :  { %v1541_v29 = vpop.f32.mrf.mxu1 }
 0x286   :  { %v1542_v30 = vadd.f32 %v1541_v29, %v934_v49 }
 0x287   :  { %v1543_v31 = vpop.f32.mrf.mxu1 }
 0x288   :  { %v1560_v57 = vmul.f32 0.5, %v1542_v30  ;;  %v1544_v33 = vadd.f32 %v1543_v31, %v938_v28 }
 0x289   :  { %v1545_v34 = vpop.f32.mrf.mxu1 }
 0x28a   :  { %2102 = vtanh.f32 %v1560_v57  ;;  %v1561_v36 = vmul.f32 0.5, %v1544_v33 }
 0x28b   :  { %v1546_v39 = vpop.f32.mrf.mxu1 }
 0x28c   :  { %2104 = vtanh.f32 %v1561_v36 }
 0x28d   :  { %2106 = vtanh.f32 %v1558_v38 }
 0x28e   :  { %2108 = vtanh.f32 %v1559_v62 }
 0x297   :  { %v2103_v46 = vpop.eup %2102 }
 0x298   :  { %v1564_v0 = vmul.f32 0.5, %v2103_v46 }
 0x299   :  { %v2105_v40 = vpop.eup %2104 }
 0x29a   :  { %v1566_v41 = vadd.f32 0.5, %v1564_v0  ;;  %v1565_v42 = vmul.f32 0.5, %v2105_v40  ;;  %v2107_v43 = vpop.eup %2106 }
 0x29b   :  { %v2109_v45 = vpop.eup %2108 }
 0x29c   :  { %v1567_v44 = vadd.f32 0.5, %v1565_v42  ;;  %v1570_v48 = vmul.f32 %v2107_v43, %v1566_v41 }
 0x29e   :  { %v1571_v50 = vmul.f32 %v2109_v45, %v1567_v44 }
 0x2a0   :  { %v1572_v51 = vmax.f32 %v1570_v48, %v1571_v50 }
 0x2a2   :  { %1573 = vst [vmem:[#allocation8] sm:$0xff] %v1572_v51 }
 0x2a3   :  { %2181 = shalt.err (!%p2178_p5)
}
 0x2a4   :  { %1583 = dma.vmem_to_hbm [thread:$0]  %s1581_s2, 128, %s2281_s3, [#allocation4]  }
 0x2a5   :  { %2194 = dma.done.wait [#allocation4], 128  }
 0x2a6   :  { %2195 = vsyncadd [#allocation4], 4294967168 }
 0x2a7   :  { %1587 = vsyncpa [#allocation3], 1 }
 0x2a8   :  { %1588 = vsyncpa [#allocation6], 1 }
 0x2a9   :  { %1589 = vsyncpa [#allocation4], 1 }

</bundles_post_ra>
